<compile_context>
chip_gen: v5e
topology: v5e:2x2
jax: 0.10.0
libtpu: 0.0.40
codegen_flags: <defaults>
</compile_context>

<pallas_src>
import functools

import jax
import jax.numpy as jnp
from jax.experimental import pallas as pl
from jax.experimental.pallas import tpu as pltpu


# --------------------------------------------------------------------------
# Kernels
# --------------------------------------------------------------------------
def _h_swish_kernel_native(x_ref, o_ref):
    # Compute in the I/O dtype (f32, or bf16 on chips with a bf16 VPU).
    x = x_ref[...]
    hs = jnp.clip(x + 3.0, 0.0, 6.0) * (1.0 / 6.0)   # h_sigmoid
    o_ref[...] = (x * hs).astype(o_ref.dtype)


def _h_swish_kernel_f32(x_ref, o_ref):
    # Upcast path for sub-32-bit dtypes on chips without native bf16 VPU (v5e).
    x = x_ref[...].astype(jnp.float32)
    hs = jnp.clip(x + 3.0, 0.0, 6.0) * (1.0 / 6.0)
    o_ref[...] = (x * hs).astype(o_ref.dtype)


def _h_swish_jnp(x):
    return x * (jnp.clip(x + 3.0, 0.0, 6.0) * (1.0 / 6.0))


# --------------------------------------------------------------------------
# Wrapper helpers
# --------------------------------------------------------------------------
def _round_up(a, b):
    return (a + b - 1) // b * b


# Sublane multiple for the second-to-last block dim, per element size.
_SUBLANE = {4: 8, 2: 16, 1: 32}


@functools.lru_cache(maxsize=None)
def _tpu_params():
    """Best-effort (generation, num_tensorcores, vmem_capacity_bytes)."""
    gen = 0
    try:
        kind = jax.devices()[0].device_kind.lower()
        for g in (7, 6, 5, 4, 3):
            if f"v{g}" in kind or f"tpu{g}" in kind:
                gen = g
                break
    except Exception:
        pass
    vmem_cap = 64 * 1024 * 1024  # conservative fallback (v7x per-TC VMEM)
    try:
        vmem_cap = int(pltpu.get_tpu_info().vmem_capacity_bytes)
    except Exception:
        pass
    num_tc = 2 if gen >= 7 else 1  # only v7x has 2 TensorCores per chip
    return gen, num_tc, vmem_cap


def _pick_lanes(n):
    """Row width L with L | n, so reshape(n//L, L) is a free contiguous regroup."""
    for cand in (512, 256, 128):       # ideal: lane-dense multiple of 128
        if n % cand == 0:
            return cand
    # Ragged counts: best divisor of n in [128, 4096], maximizing vreg lane
    # utilization (full-row blocks are allowed for any last-dim == full dim).
    best, best_score = None, -1.0
    for d in range(128, min(n, 4096) + 1):
        if n % d == 0:
            util = d / _round_up(d, 128)
            score = util + d * 1e-7    # tie-break toward wider rows
            if score > best_score:
                best, best_score = d, score
    return best


# --------------------------------------------------------------------------
# Public wrapper
# --------------------------------------------------------------------------
def h_swish(x: jax.Array, *, min_pallas_bytes: int = 256 * 1024,
            donate: bool = False, max_block_bytes: int | None = None) -> jax.Array:
    """Elementwise h_swish on an arbitrary-shaped array (NCHW expected)."""
    orig_shape = x.shape
    orig_dtype = x.dtype
    n = x.size
    itemsize = jnp.dtype(orig_dtype).itemsize

    # Small-input fallback: launch/reshape overhead dominates; XLA fuses fine.
    if n == 0 or n * itemsize < min_pallas_bytes:
        return _h_swish_jnp(x)

    lanes = _pick_lanes(n)
    if lanes is None:
        # TODO(synk): no usable row factor (e.g. prime-ish n); a fused XLA
        # elementwise op is already at the HBM roofline, so avoid the
        # pad+slice copies entirely.
        return _h_swish_jnp(x)

    gen, num_tc, vmem_cap = _tpu_params()
    sub = _SUBLANE.get(itemsize, 8)
    rows = n // lanes
    x2d = jnp.reshape(x, (rows, lanes))          # free: contiguous regroup

    lanes_padded = _round_up(lanes, 128)         # VMEM lane padding
    row_bytes = lanes_padded * itemsize

    # ~8 MiB blocks on every generation (vmem_cap//8 keeps v7x's 64 MiB VMEM
    # at ~32 MiB resident with in+out double-buffered).
    block_bytes_target = min(8 * 1024 * 1024, vmem_cap // 8)
    if max_block_bytes is not None:
        block_bytes_target = min(block_bytes_target, max_block_bytes)

    block_rows = max(sub, (block_bytes_target // row_bytes) // sub * sub)
    if block_rows >= rows:
        block_rows = rows                        # single full-array block
        grid_len = 1
    else:
        grid_len = pl.cdiv(rows, block_rows)

    # Only split for parallelism on multi-TensorCore chips (v7x); on v5e/v6e
    # a forced split just adds grid-step overhead and a masked partial block.
    if num_tc > 1 and rows >= num_tc * sub:
        if grid_len < num_tc:
            block_rows = _round_up(pl.cdiv(rows, num_tc), sub)
            grid_len = pl.cdiv(rows, block_rows)
        elif grid_len < 8 and grid_len % num_tc != 0:
            # Best-effort: make the step count a multiple of the TC count.
            target_steps = _round_up(grid_len, num_tc)
            block_rows = max(sub, _round_up(pl.cdiv(rows, target_steps), sub))
            grid_len = pl.cdiv(rows, block_rows)

    # bf16 stays bf16 on chips with a bf16 VPU (v6e/v7x); upcast elsewhere.
    use_native = (orig_dtype == jnp.float32) or \
                 (orig_dtype == jnp.bfloat16 and gen >= 6)
    kernel = _h_swish_kernel_native if use_native else _h_swish_kernel_f32

    idx_map = lambda i: (i, 0)

    # Deeper input pipelining on v7x where per-block DMAs are short.
    deep_pipeline = (gen >= 7 and grid_len >= 3)
    in_spec = None
    if deep_pipeline:
        try:
            in_spec = pl.BlockSpec((block_rows, lanes), idx_map,
                                   pipeline_mode=pl.Buffered(3))
        except Exception:
            deep_pipeline = False
    if in_spec is None:
        in_spec = pl.BlockSpec((block_rows, lanes), idx_map)

    block_bytes = block_rows * row_bytes
    n_in_bufs = 3 if deep_pipeline else 2
    vmem_limit = (n_in_bufs + 2) * block_bytes + (8 << 20)
    vmem_limit = int(min(vmem_cap * 3 // 4, max(vmem_limit, 16 << 20)))

    call_kwargs = {}
    if donate:
        # Caller must donate x; output then reuses the input HBM buffer.
        call_kwargs["input_output_aliases"] = {0: 0}

    out2d = pl.pallas_call(
        kernel,
        out_shape=jax.ShapeDtypeStruct((rows, lanes), orig_dtype),
        grid_spec=pltpu.PrefetchScalarGridSpec(
            num_scalar_prefetch=0,
            grid=(grid_len,),
            in_specs=[in_spec],
            out_specs=pl.BlockSpec((block_rows, lanes), idx_map),
        ),
        compiler_params=pltpu.CompilerParams(
            dimension_semantics=("parallel",),
            vmem_limit_bytes=vmem_limit,
        ),
        cost_estimate=pl.CostEstimate(
            flops=5 * n,                      # add, two clamps, two muls
            transcendentals=0,
            bytes_accessed=2 * n * itemsize,  # zero-copy path: exactly 2n
        ),
        **call_kwargs,
    )(x2d)

    return out2d.reshape(orig_shape)             # free: contiguous regroup


def h_swish_ref(x):
    return x * (jnp.clip(x + 3.0, 0.0, 6.0) / 6.0)


if __name__ == "__main__":
    key = jax.random.PRNGKey(0)
    k1, k2, k3, k4 = jax.random.split(key, 4)

    # Small NCHW input like the JDFNet conv stack, forced through Pallas.
    x1 = jax.random.normal(k1, (2, 4, 16, 16), dtype=jnp.float32) * 4.0
    y1 = h_swish(x1, min_pallas_bytes=0)
    jax.block_until_ready(y1)
    assert y1.shape == x1.shape and y1.dtype == x1.dtype
    assert jnp.allclose(y1, h_swish_ref(x1), atol=1e-6, rtol=1e-6)

    # bf16 I/O: native bf16 compute on v6e/v7x, f32 upcast on v5e.
    x2 = (jax.random.normal(k2, (2, 8, 32, 32), dtype=jnp.float32) * 4.0
          ).astype(jnp.bfloat16)
    y2 = h_swish(x2, min_pallas_bytes=0)
    jax.block_until_ready(y2)
    assert y2.shape == x2.shape and y2.dtype == x2.dtype
    assert jnp.allclose(y2.astype(jnp.float32),
                        h_swish_ref(x2.astype(jnp.float32)),
                        atol=1e-1, rtol=1e-2)

    # Ragged element count (n = 4845): zero-copy divisor reshape to (3, 1615).
    x3 = jax.random.normal(k3, (3, 5, 17, 19), dtype=jnp.float32) * 4.0
    y3 = h_swish(x3, min_pallas_bytes=0)
    jax.block_until_ready(y3)
    assert jnp.allclose(y3, h_swish_ref(x3), atol=1e-6, rtol=1e-6)

    # Multi-block grid with a partial last block (forced small block size).
    x4 = jax.random.normal(k4, (5, 8, 16, 16), dtype=jnp.float32) * 4.0
    y4 = h_swish(x4, min_pallas_bytes=0, max_block_bytes=8 * 512 * 4)
    jax.block_until_ready(y4)
    assert jnp.allclose(y4, h_swish_ref(x4), atol=1e-6, rtol=1e-6)

    # Small-input fallback path (pure fused XLA) still matches.
    y1_fb = h_swish(x1)
    jax.block_until_ready(y1_fb)
    assert jnp.allclose(y1_fb, h_swish_ref(x1), atol=1e-6, rtol=1e-6)

    print("KERNEL_OK")
</pallas_src>

<mosaic_0001>
module attributes {stable_mosaic.version = 11 : i64} {
  func.func @_h_swish_kernel_native(%arg0: i32, %arg1: memref<4x512xf32, #tpu.memory_space<vmem>>, %arg2: memref<4x512xf32, #tpu.memory_space<vmem>>) attributes {dimension_semantics = [#tpu.dimension_semantics<parallel>], iteration_bounds = array<i64: 1>, scalar_prefetch = 0 : i64, scratch_operands = 0 : i64, tpu.core_type = #tpu.core_type<tc>, window_params = [{transform_indices = @transform_0, window_bounds = array<i64: 4, 512>}, {transform_indices = @transform_1, window_bounds = array<i64: 4, 512>}]} {
    %c0 = arith.constant 0 : index
    %c0_0 = arith.constant 0 : index
    %0 = vector.load %arg1[%c0, %c0_0] : memref<4x512xf32, #tpu.memory_space<vmem>>, vector<4x512xf32>
    %cst = arith.constant 3.000000e+00 : f32
    %1 = vector.broadcast %cst : f32 to vector<4x512xf32>
    %2 = arith.addf %0, %1 : vector<4x512xf32>
    %cst_1 = arith.constant 0.000000e+00 : f32
    %cst_2 = arith.constant 6.000000e+00 : f32
    %3 = vector.broadcast %cst_1 : f32 to vector<4x512xf32>
    %4 = arith.maximumf %3, %2 : vector<4x512xf32>
    %5 = vector.broadcast %cst_2 : f32 to vector<4x512xf32>
    %6 = arith.minimumf %5, %4 : vector<4x512xf32>
    %cst_3 = arith.constant 0.166666672 : f32
    %7 = vector.broadcast %cst_3 : f32 to vector<4x512xf32>
    %8 = arith.mulf %6, %7 : vector<4x512xf32>
    %9 = arith.mulf %0, %8 : vector<4x512xf32>
    %c0_4 = arith.constant 0 : index
    %c0_5 = arith.constant 0 : index
    %10 = vector.load %arg2[%c0_4, %c0_5] : memref<4x512xf32, #tpu.memory_space<vmem>>, vector<4x512xf32>
    tpu.vector_store %arg2[%c0_4, %c0_5], %9 {strides = array<i32>} : memref<4x512xf32, #tpu.memory_space<vmem>>, vector<4x512xf32>,
    return
  }
  func.func @transform_0(%arg0: i32) -> (i32, i32) {
    %c0_i32 = arith.constant 0 : i32
    %c0_i32_0 = arith.constant 0 : i32
    return %arg0, %c0_i32 : i32, i32
  }
  func.func @transform_1(%arg0: i32) -> (i32, i32) {
    %c0_i32 = arith.constant 0 : i32
    %c0_i32_0 = arith.constant 0 : i32
    return %arg0, %c0_i32 : i32, i32
  }
}

</mosaic_0001>

<bundles_post_ra>
// kernel: tpu_custom_call.1
= control target key start
LH: loop header
LB: loop body
LE: loop exit
PB: predicated region body
PF: predicated region fallthrough
CT: control target
= control target key end

     0   :  { %6 = vsyncpa [#allocation3], 0  ;;  %s126_s0 = inlined_call_operand.hbm [shape: f32[4,512], index: 0, kind: input, shape index: {}]   ;;  %s127_s1 = inlined_call_operand.hbm [shape: f32[4,512], index: 1, kind: output, shape index: {}]  }
   0x1   :  { %7 = vsyncpa [#allocation4], 0  ;;  %s13_s8 = sshll.u32 %s126_s0, 4  ;;  %s108_s9 = smov [#allocation2]   ;;  %s14_s8 = int_to_ptr.hbm [resolvable:$true] %s13_s8 }
   0x2   :  { %s15_s10 = sshll.u32 %s108_s9, 4  ;;  %s16_s10 = int_to_ptr.vmem [resolvable:$true] %s15_s10 }
   0x3   :  { %18 = dma.hbm_to_vmem [thread:$0]  %s14_s8, 256, %s16_s10, [#allocation3]  }
   0x4   :  { %104 = dma.done.wait [#allocation3], 256  }
   0x5   :  { %105 = vsyncadd [#allocation3], 4294967040  ;;  %v23_v0 = vld [vmem:[#allocation2] sm:$0xff]  ;;  %v24_v1 = vld [vmem:[#allocation2 + $0x8] sm:$0xff]  ;;  %s109_s11 = smov [#allocation5]   ;;  %s44_s14 = sshll.u32 %s127_s1, 4  ;;  %s45_s14 = int_to_ptr.hbm [resolvable:$true] %s44_s14 }
   0x6   :  { %v25_v2 = vadd.f32 3.0, %v23_v0  ;;  %v26_v3 = vadd.f32 3.0, %v24_v1  ;;  %s42_s12 = sshll.u32 %s109_s11, 4  ;;  %s43_s12 = int_to_ptr.vmem [resolvable:$true] %s42_s12 }
   0x8   :  { %v27_v4 = vmax.f32 %v25_v2, 0.0  ;;  %v28_v5 = vmax.f32 %v26_v3, 0.0 }
   0xa   :  { %v29_v6 = vmin.f32 %v27_v4, 6.0  ;;  %v30_v7 = vmin.f32 %v28_v5, 6.0 }
   0xc   :  { %v31_v8 = vmul.f32 0.16666667, %v29_v6  ;;  %v32_v9 = vmul.f32 0.16666667, %v30_v7 }
   0xe   :  { %v33_v10 = vmul.f32 %v31_v8, %v23_v0  ;;  %v34_v11 = vmul.f32 %v32_v9, %v24_v1 }
  0x10   :  { %35 = vst [vmem:[#allocation5] sm:$0xff] %v33_v10 }
  0x11   :  { %36 = vst [vmem:[#allocation5 + $0x8] sm:$0xff] %v34_v11 }
  0x12   :  { %47 = dma.vmem_to_hbm [thread:$0]  %s43_s12, 256, %s45_s14, [#allocation4]  }
  0x13   :  { %106 = dma.done.wait [#allocation4], 256  }
  0x14   :  { %107 = vsyncadd [#allocation4], 4294967040 }
  0x15   :  { %52 = vsyncpa [#allocation3], 1 }
  0x16   :  { %53 = vsyncpa [#allocation4], 1 }

</bundles_post_ra>
